<compile_context>
chip_gen: v6e
topology: v6e:2x2x1
jax: 0.10.0
libtpu: 0.0.40
codegen_flags: <defaults>
</compile_context>

<pallas_src>
import functools

import jax
import jax.numpy as jnp
from jax.experimental import pallas as pl
from jax.experimental.pallas import tpu as pltpu

_VMEM_LIMIT = 32 * 1024 * 1024      # explicit scoped-VMEM limit (safe on v5e/v6e/v7x)
_STEP_BUDGET = 8 * 1024 * 1024      # target per-grid-step VMEM footprint


# --------------------------------------------------------------------------
# Pallas kernels
# --------------------------------------------------------------------------

def _conv3x3_kernel(x_ref, w_ref, b_ref, *rest, TH, W, Cin, Cout, act, nm):
    """Fused im2col 3x3 conv on one (TH x W) row strip of one image.

    x_ref : (1, 1, TH+2, W+2, Cin) bf16 pre-padded row strip (halo included)
    w_ref : (9*Cin, Cout) bf16
    b_ref : (1, Cout) f32
    rest  : (mask_ref, out_ref) if nm > 0 else (out_ref,)
            mask_ref: (1, TH*W, nm) f32;  out_ref: (1, TH*W, Cout*(nm or 1))
    """
    if nm:
        m_ref, o_ref = rest
    else:
        (o_ref,) = rest

    x = x_ref[0, 0]                                       # (TH+2, W+2, Cin) bf16
    cols = []
    for dy in range(3):
        for dx in range(3):
            cols.append(x[dy:dy + TH, dx:dx + W, :])      # (TH, W, Cin)
    patches = jnp.concatenate(cols, axis=-1).reshape(TH * W, 9 * Cin)

    acc = jnp.dot(patches, w_ref[...], preferred_element_type=jnp.float32)
    acc = acc + b_ref[...]
    if act == "leaky":
        acc = jnp.where(acc > 0, acc, 0.2 * acc)
    elif act == "tanh":
        acc = jnp.tanh(acc)

    if nm:
        m = m_ref[0]                                      # (TH*W, nm) f32
        # channel block k = acc * mask[:, k]  (outputs mask, neural-img mask)
        out = jnp.concatenate([acc * m[:, k:k + 1] for k in range(nm)], axis=-1)
        o_ref[0] = out.astype(o_ref.dtype)
    else:
        o_ref[0] = acc.astype(o_ref.dtype)


def _bilinear_kernel(uv_ref, ii_ref, jj_ref, tex_ref, o_ref, *, S):
    """Bilinear texture sampling for one HW tile as a dense-weight MXU matmul.

    uv_ref : (1, TQ, 2) f32 in [0,1];  ii/jj : (1, S*S) f32 texel row/col indices
    tex_ref: (1, S*S, C) bf16;  o_ref: (1, TQ, C)
    """
    uv = uv_ref[0]                                        # (TQ, 2)
    # align_corners=True convention: uv in [0,1] -> pixel coords [0, S-1]
    x = jnp.clip(uv[:, 0:1] * (S - 1), 0.0, float(S - 1))  # u -> width index
    y = jnp.clip(uv[:, 1:2] * (S - 1), 0.0, float(S - 1))  # v -> height index
    ii = ii_ref[...]                                       # (1, S*S) height index
    jj = jj_ref[...]                                       # (1, S*S) width  index
    w = (jnp.maximum(0.0, 1.0 - jnp.abs(y - ii)) *
         jnp.maximum(0.0, 1.0 - jnp.abs(x - jj)))          # (TQ, S*S) bilinear tent
    o_ref[0] = jnp.dot(w.astype(jnp.bfloat16), tex_ref[0],
                       preferred_element_type=jnp.float32).astype(o_ref.dtype)


# --------------------------------------------------------------------------
# Wrappers
# --------------------------------------------------------------------------

def _pick_tile_h(H, W, Cin, Cout, tile_h=None, budget=_STEP_BUDGET):
    def ok(th):
        return H % th == 0 and (th == H or (th * W) % 8 == 0)
    if tile_h is not None and ok(tile_h):
        return tile_h
    for th in range(min(H, 256), 0, -1):
        if not ok(th):
            continue
        per_step = (2 * (th + 2) * (W + 2) * Cin * 2       # bf16 strip, 2 buffers
                    + 2 * th * W * Cout * 4                # output, 2 buffers
                    + th * W * 9 * Cin * 2                 # im2col intermediate
                    + th * W * Cout * 4)                   # f32 accumulator
        if per_step <= budget:
            return th
    return H


def conv3x3(x, w9, bias, act, *, mask=None, out_dtype=jnp.bfloat16, tile_h=None):
    """x: (B,H,W,Cin) NHWC, w9: (9,Cin,Cout), bias: (1,Cout), mask: (B,H*W,nm) or None.
    Returns flat (B, H*W, Cout*(nm or 1))."""
    B, H, W, Cin = x.shape
    Cout = w9.shape[-1]
    nm = 0 if mask is None else mask.shape[-1]
    Cout_total = Cout * (nm if nm else 1)

    TH = _pick_tile_h(H, W, Cin, Cout, tile_h)
    nR = H // TH

    # bf16 activations, pre-padded overlapping row strips (halo rows included)
    xb = x.astype(jnp.bfloat16)
    xp = jnp.pad(xb, ((0, 0), (1, 1), (1, 1), (0, 0)))     # (B, H+2, W+2, Cin)
    strips = jnp.stack(
        [jax.lax.slice_in_dim(xp, r * TH, r * TH + TH + 2, axis=1) for r in range(nR)],
        axis=1)                                            # (B, nR, TH+2, W+2, Cin)

    w2d = w9.reshape(9 * Cin, Cout).astype(jnp.bfloat16)
    b2d = bias.astype(jnp.float32)

    in_specs = [
        pl.BlockSpec((1, 1, TH + 2, W + 2, Cin), lambda b, r: (b, r, 0, 0, 0)),
        pl.BlockSpec((9 * Cin, Cout), lambda b, r: (0, 0)),
        pl.BlockSpec((1, Cout), lambda b, r: (0, 0)),
    ]
    inputs = [strips, w2d, b2d]
    if nm:
        in_specs.append(pl.BlockSpec((1, TH * W, nm), lambda b, r: (b, r, 0)))
        inputs.append(mask.astype(jnp.float32))

    kernel = functools.partial(_conv3x3_kernel, TH=TH, W=W, Cin=Cin, Cout=Cout,
                               act=act, nm=nm)
    return pl.pallas_call(
        kernel,
        out_shape=jax.ShapeDtypeStruct((B, H * W, Cout_total), out_dtype),
        grid=(B, nR),
        in_specs=in_specs,
        out_specs=pl.BlockSpec((1, TH * W, Cout_total), lambda b, r: (b, r, 0)),
        compiler_params=pltpu.CompilerParams(
            dimension_semantics=("parallel", "parallel"),
            vmem_limit_bytes=_VMEM_LIMIT),
    )(*inputs)


def _pick_tile_q(HW, SS, C, tile_q=None, budget=_STEP_BUDGET):
    def ok(tq):
        return HW % tq == 0 and (tq == HW or tq % 8 == 0)
    if tile_q is not None and ok(tile_q):
        return tile_q
    for tq in (8192, 4096, 2048, 1024, 512, 256, 128, 64, 32, 16, 8):
        if tq <= HW and ok(tq):
            per_step = (tq * SS * 4 + tq * SS * 2          # tent weight f32 + bf16 copy
                        + 2 * tq * 2 * 4                   # uv blocks
                        + 2 * tq * C * 2                   # output blocks
                        + 2 * SS * C * 2)                  # resident texture
            if per_step <= budget:
                return tq
    return HW


def bilinear_sample(uv_flat, tex_flat, S, *, tile_q=None):
    """uv_flat: (B,HW,2) in [0,1], tex_flat: (B,S*S,C) -> (B,HW,C) bf16."""
    B, HW, _ = uv_flat.shape
    SS, C = tex_flat.shape[1], tex_flat.shape[2]
    TQ = _pick_tile_q(HW, SS, C, tile_q)
    nT = HW // TQ

    q = jnp.arange(SS, dtype=jnp.int32)
    ii = (q // S).astype(jnp.float32).reshape(1, SS)       # height (slow) texel index
    jj = (q % S).astype(jnp.float32).reshape(1, SS)        # width  (fast) texel index

    kernel = functools.partial(_bilinear_kernel, S=S)
    return pl.pallas_call(
        kernel,
        out_shape=jax.ShapeDtypeStruct((B, HW, C), jnp.bfloat16),
        grid=(B, nT),
        in_specs=[
            pl.BlockSpec((1, TQ, 2), lambda b, t: (b, t, 0)),
            pl.BlockSpec((1, SS), lambda b, t: (0, 0)),
            pl.BlockSpec((1, SS), lambda b, t: (0, 0)),
            pl.BlockSpec((1, SS, C), lambda b, t: (b, 0, 0)),
        ],
        out_specs=pl.BlockSpec((1, TQ, C), lambda b, t: (b, t, 0)),
        compiler_params=pltpu.CompilerParams(
            dimension_semantics=("parallel", "parallel"),
            vmem_limit_bytes=_VMEM_LIMIT),
    )(uv_flat.astype(jnp.float32), ii, jj, tex_flat.astype(jnp.bfloat16))


# --------------------------------------------------------------------------
# Plain-JAX glue
# --------------------------------------------------------------------------

def texture_creater(img_nhwc, uv_map, tex_size):
    """Scatter image colors into UV texture space (nearest, mean over duplicates)."""
    # TODO(synk): exact network.TextureCreater semantics unknown; scatter stays in plain JAX.
    B, H, W, C = img_nhwc.shape
    S = tex_size
    iu = jnp.clip(jnp.round(uv_map[..., 0] * (S - 1)), 0, S - 1).astype(jnp.int32)
    iv = jnp.clip(jnp.round(uv_map[..., 1] * (S - 1)), 0, S - 1).astype(jnp.int32)
    b_idx = jnp.broadcast_to(jnp.arange(B)[:, None, None], (B, H, W))
    tex = jnp.zeros((B, S, S, C), jnp.float32).at[b_idx, iv, iu].add(img_nhwc)
    cnt = jnp.zeros((B, S, S, 1), jnp.float32).at[b_idx, iv, iu].add(
        jnp.ones((B, H, W, 1), jnp.float32))
    return tex / jnp.maximum(cnt, 1.0)


def init_params(key, cfg):
    S = cfg["tex_size"]
    Ct = cfg["tex_creater_ch"]
    Cm = cfg["tex_mapper_ch"]
    nf_f, nf_r = cfg["feature_nf0"], cfg["render_nf0"]
    ks = jax.random.split(key, 5)

    def w(k, cin, cout):
        return 0.1 * jax.random.normal(k, (9, cin, cout), jnp.float32)

    def b(cout):
        return jnp.zeros((1, cout), jnp.float32)

    return {
        # texture_mapper.textures[0] : (1, S, S, Cm)
        "texture0": 0.1 * jax.random.normal(ks[0], (1, S, S, Cm), jnp.float32),
        # FeatureModule: in = Cm + Ct -> nf0 -> Cm
        "feat_w1": w(ks[1], Cm + Ct, nf_f), "feat_b1": b(nf_f),
        "feat_w2": w(ks[2], nf_f, Cm), "feat_b2": b(Cm),
        # RenderingModule: in = Cm -> nf0 -> 3
        "rend_w1": w(ks[3], Cm, nf_r), "rend_b1": b(nf_r),
        "rend_w2": w(ks[4], nf_r, 3), "rend_b2": b(3),
    }


def feature_net_forward(params, cfg, uv_map, img_gt=None, alpha_map=None, ROI=None):
    """uv_map: (B,H,W,2) in [0,1]; img_gt: (B,3,H,W); alpha_map/ROI: (B,1,H,W).
    Returns NCHW concat of (outputs, neural_img) on channels, matching
    torch.cat((outputs, self.neural_img), dim=1)."""
    B, H, W, _ = uv_map.shape
    S, Cm = cfg["tex_size"], cfg["tex_mapper_ch"]
    th = cfg.get("conv_tile_h")
    tq = cfg.get("bilinear_tile_q")

    # ----- TextureCreater + FeatureModule ---------------------------------
    if img_gt is not None:
        img_nhwc = jnp.transpose(img_gt, (0, 2, 3, 1))
        orig_tex = texture_creater(img_nhwc, uv_map, S)                 # (B,S,S,Ct)
        tex0 = jnp.broadcast_to(params["texture0"], (B, S, S, Cm))
        feat_in = jnp.concatenate([tex0, orig_tex], axis=-1)            # (B,S,S,Cm+Ct)
        h = conv3x3(feat_in, params["feat_w1"], params["feat_b1"], "leaky",
                    tile_h=th).reshape(B, S, S, -1)
        neural_tex = conv3x3(h, params["feat_w2"], params["feat_b2"], "tanh",
                             tile_h=th).reshape(B, S, S, Cm)
    else:
        neural_tex = jnp.broadcast_to(params["texture0"], (B, S, S, Cm))

    # ----- TextureMapper: bilinear sample of neural texture at uv_map -----
    uv_flat = uv_map.reshape(B, H * W, 2)
    tex_flat = neural_tex.reshape(B, S * S, Cm)
    neural_img_flat = bilinear_sample(uv_flat, tex_flat, S, tile_q=tq)  # (B,HW,Cm) bf16

    # ----- RenderingModule -------------------------------------------------
    h = conv3x3(neural_img_flat.reshape(B, H, W, Cm),
                params["rend_w1"], params["rend_b1"], "leaky",
                tile_h=th).reshape(B, H, W, -1)

    if alpha_map is not None or ROI is not None:
        # torch: outputs = r*a; neural = outputs*a; then outputs *= ROI; neural = outputs*ROI
        ones = jnp.ones((B, H, W, 1), jnp.float32)
        a = jnp.transpose(alpha_map, (0, 2, 3, 1)) if alpha_map is not None else ones
        r = jnp.transpose(ROI, (0, 2, 3, 1)) if ROI is not None else ones
        m_out = a * r
        m_last = r if ROI is not None else a
        mask2 = jnp.concatenate([m_out, m_out * m_last], axis=-1).reshape(B, H * W, 2)
        out6 = conv3x3(h, params["rend_w2"], params["rend_b2"], "tanh",
                       mask=mask2, out_dtype=jnp.float32, tile_h=th)    # (B,HW,6)
        return jnp.transpose(out6.reshape(B, H, W, 6), (0, 3, 1, 2))    # (B,6,H,W)
    else:
        out3 = conv3x3(h, params["rend_w2"], params["rend_b2"], "tanh",
                       out_dtype=jnp.float32, tile_h=th).reshape(B, H, W, 3)
        nimg = neural_img_flat.astype(jnp.float32).reshape(B, H, W, Cm)
        return jnp.concatenate([jnp.transpose(out3, (0, 3, 1, 2)),
                                jnp.transpose(nimg, (0, 3, 1, 2))], axis=1)


# --------------------------------------------------------------------------
# Reference (for self-check only)
# --------------------------------------------------------------------------

def conv3x3_reference(x, w9, bias, act):
    """Plain-JAX reference using the same bf16-quantized operands as the kernel."""
    B, H, W, Cin = x.shape
    Cout = w9.shape[-1]
    xq = x.astype(jnp.bfloat16).astype(jnp.float32)
    wq = w9.astype(jnp.bfloat16).astype(jnp.float32)
    xp = jnp.pad(xq, ((0, 0), (1, 1), (1, 1), (0, 0)))
    acc = jnp.zeros((B, H, W, Cout), jnp.float32)
    for dy in range(3):
        for dx in range(3):
            acc = acc + jnp.einsum("bhwc,cd->bhwd",
                                   xp[:, dy:dy + H, dx:dx + W, :], wq[dy * 3 + dx],
                                   precision=jax.lax.Precision.HIGHEST)
    acc = acc + bias.reshape(1, 1, 1, Cout)
    if act == "leaky":
        return jnp.where(acc > 0, acc, 0.2 * acc)
    return jnp.tanh(acc)


# --------------------------------------------------------------------------

if __name__ == "__main__":
    cfg = dict(tex_size=16, tex_creater_ch=3, tex_mapper_ch=8,
               feature_nf0=16, render_nf0=16,
               conv_tile_h=8, bilinear_tile_q=128)
    B, H, W = 2, 16, 16
    S, Cm = cfg["tex_size"], cfg["tex_mapper_ch"]

    key = jax.random.PRNGKey(0)
    k_uv, k_img, k_a, k_p, k_cx, k_cw, k_tex = jax.random.split(key, 7)
    uv_map = jax.random.uniform(k_uv, (B, H, W, 2), jnp.float32)
    img_gt = jax.random.normal(k_img, (B, 3, H, W), jnp.float32)
    alpha_map = (jax.random.uniform(k_a, (B, 1, H, W)) > 0.3).astype(jnp.float32)
    params = init_params(k_p, cfg)

    # --- self-check 1: tiled fused-im2col conv vs plain-JAX reference ------
    xt = jax.random.normal(k_cx, (B, H, W, 8), jnp.float32)
    wt = 0.1 * jax.random.normal(k_cw, (9, 8, 16), jnp.float32)
    bt = jnp.zeros((1, 16), jnp.float32)
    got = conv3x3(xt, wt, bt, "leaky", out_dtype=jnp.float32,
                  tile_h=8).reshape(B, H, W, 16)
    ref = conv3x3_reference(xt, wt, bt, "leaky")
    err = float(jnp.max(jnp.abs(got - ref)))
    assert err < 2e-2, f"conv3x3 mismatch: {err}"

    # --- self-check 2: bilinear sampling at texel centers returns the texels
    tex = 0.1 * jax.random.normal(k_tex, (1, S * S, Cm), jnp.float32)
    gy, gx = jnp.meshgrid(jnp.arange(S), jnp.arange(S), indexing="ij")
    uv_c = (jnp.stack([gx, gy], axis=-1).reshape(1, S * S, 2)
            .astype(jnp.float32) / (S - 1))
    samp = bilinear_sample(uv_c, tex, S, tile_q=128).astype(jnp.float32)
    err2 = float(jnp.max(jnp.abs(samp - tex)))
    assert err2 < 2e-2, f"bilinear mismatch: {err2}"

    # --- full forward (masked path: 6-channel output) ----------------------
    out = feature_net_forward(params, cfg, uv_map, img_gt=img_gt, alpha_map=alpha_map)
    out = jax.block_until_ready(out)
    assert out.shape == (B, 6, H, W), out.shape
    assert bool(jnp.all(jnp.isfinite(out)))

    # --- no-img / no-mask path: outputs concat with Cm-channel neural image
    out2 = feature_net_forward(params, cfg, uv_map)
    out2 = jax.block_until_ready(out2)
    assert out2.shape == (B, 3 + Cm, H, W), out2.shape
    assert bool(jnp.all(jnp.isfinite(out2)))

    print("KERNEL_OK")
</pallas_src>

<mosaic_0001>
module attributes {stable_mosaic.version = 11 : i64} {
  func.func @_conv3x3_kernel(%arg0: i32, %arg1: i32, %arg2: memref<1x1x10x18x8xbf16, #tpu.memory_space<vmem>>, %arg3: memref<72x16xbf16, #tpu.memory_space<vmem>>, %arg4: memref<1x16xf32, #tpu.memory_space<vmem>>, %arg5: memref<1x128x16xf32, #tpu.memory_space<vmem>>) attributes {dimension_semantics = [#tpu.dimension_semantics<parallel>, #tpu.dimension_semantics<parallel>], iteration_bounds = array<i64: 2, 2>, scalar_prefetch = 0 : i64, scratch_operands = 0 : i64, tpu.core_type = #tpu.core_type<tc>, window_params = [{transform_indices = @transform_0, window_bounds = array<i64: 1, 1, 10, 18, 8>}, {pipeline_mode = #tpu.pipeline_mode<synchronous>, transform_indices = @transform_1, window_bounds = array<i64: 72, 16>}, {pipeline_mode = #tpu.pipeline_mode<synchronous>, transform_indices = @transform_2, window_bounds = array<i64: 1, 16>}, {transform_indices = @transform_3, window_bounds = array<i64: 1, 128, 16>}]} {
    %c0 = arith.constant 0 : index
    %c0_0 = arith.constant 0 : index
    %c0_1 = arith.constant 0 : index
    %c0_2 = arith.constant 0 : index
    %c0_3 = arith.constant 0 : index
    %0 = vector.load %arg2[%c0, %c0_0, %c0_1, %c0_2, %c0_3] : memref<1x1x10x18x8xbf16, #tpu.memory_space<vmem>>, vector<1x1x10x18x8xbf16>
    %1 = vector.shape_cast %0 : vector<1x1x10x18x8xbf16> to vector<10x18x8xbf16>
    %2 = vector.extract_strided_slice %1 {offsets = [0, 0, 0], sizes = [8, 16, 8], strides = [1, 1, 1]} : vector<10x18x8xbf16> to vector<8x16x8xbf16>
    %3 = vector.extract_strided_slice %1 {offsets = [0, 1, 0], sizes = [8, 16, 8], strides = [1, 1, 1]} : vector<10x18x8xbf16> to vector<8x16x8xbf16>
    %4 = vector.extract_strided_slice %1 {offsets = [0, 2, 0], sizes = [8, 16, 8], strides = [1, 1, 1]} : vector<10x18x8xbf16> to vector<8x16x8xbf16>
    %5 = vector.extract_strided_slice %1 {offsets = [1, 0, 0], sizes = [8, 16, 8], strides = [1, 1, 1]} : vector<10x18x8xbf16> to vector<8x16x8xbf16>
    %6 = vector.extract_strided_slice %1 {offsets = [1, 1, 0], sizes = [8, 16, 8], strides = [1, 1, 1]} : vector<10x18x8xbf16> to vector<8x16x8xbf16>
    %7 = vector.extract_strided_slice %1 {offsets = [1, 2, 0], sizes = [8, 16, 8], strides = [1, 1, 1]} : vector<10x18x8xbf16> to vector<8x16x8xbf16>
    %8 = vector.extract_strided_slice %1 {offsets = [2, 0, 0], sizes = [8, 16, 8], strides = [1, 1, 1]} : vector<10x18x8xbf16> to vector<8x16x8xbf16>
    %9 = vector.extract_strided_slice %1 {offsets = [2, 1, 0], sizes = [8, 16, 8], strides = [1, 1, 1]} : vector<10x18x8xbf16> to vector<8x16x8xbf16>
    %10 = vector.extract_strided_slice %1 {offsets = [2, 2, 0], sizes = [8, 16, 8], strides = [1, 1, 1]} : vector<10x18x8xbf16> to vector<8x16x8xbf16>
    %11 = tpu.concatenate %2, %3, %4, %5, %6, %7, %8, %9, %10 in 2 : vector<8x16x8xbf16>, vector<8x16x8xbf16>, vector<8x16x8xbf16>, vector<8x16x8xbf16>, vector<8x16x8xbf16>, vector<8x16x8xbf16>, vector<8x16x8xbf16>, vector<8x16x8xbf16>, vector<8x16x8xbf16> -> vector<8x16x72xbf16>
    %12 = vector.shape_cast %11 : vector<8x16x72xbf16> to vector<128x72xbf16>
    %c0_4 = arith.constant 0 : index
    %c0_5 = arith.constant 0 : index
    %13 = vector.load %arg3[%c0_4, %c0_5] : memref<72x16xbf16, #tpu.memory_space<vmem>>, vector<72x16xbf16>
    %cst = arith.constant dense<0.000000e+00> : vector<128x16xf32>
    %14 = tpu.matmul %12, %13, %cst {dimension_numbers = #tpu.dot_dimension_numbers<[1], [0], [0], [1], [0, 0, 1, 1], [], []>} : vector<128x72xbf16>, vector<72x16xbf16>, vector<128x16xf32> -> vector<128x16xf32>
    %c0_6 = arith.constant 0 : index
    %c0_7 = arith.constant 0 : index
    %15 = vector.load %arg4[%c0_6, %c0_7] : memref<1x16xf32, #tpu.memory_space<vmem>>, vector<1x16xf32>
    %16 = vector.broadcast %15 : vector<1x16xf32> to vector<128x16xf32>
    %17 = arith.addf %14, %16 : vector<128x16xf32>
    %cst_8 = arith.constant 0.000000e+00 : f32
    %18 = vector.broadcast %cst_8 : f32 to vector<128x16xf32>
    %19 = arith.cmpf ogt, %17, %18 : vector<128x16xf32>
    %cst_9 = arith.constant 2.000000e-01 : f32
    %20 = vector.broadcast %cst_9 : f32 to vector<128x16xf32>
    %21 = arith.mulf %20, %17 : vector<128x16xf32>
    %22 = arith.select %19, %17, %21 : vector<128x16xi1>, vector<128x16xf32>
    %c0_10 = arith.constant 0 : index
    %c0_11 = arith.constant 0 : index
    %c0_12 = arith.constant 0 : index
    %23 = vector.load %arg5[%c0_10, %c0_11, %c0_12] : memref<1x128x16xf32, #tpu.memory_space<vmem>>, vector<1x128x16xf32>
    %24 = vector.shape_cast %23 : vector<1x128x16xf32> to vector<128x16xf32>
    %25 = vector.shape_cast %22 : vector<128x16xf32> to vector<1x128x16xf32>
    tpu.vector_store %arg5[%c0_10, %c0_11, %c0_12], %25 {strides = array<i32>} : memref<1x128x16xf32, #tpu.memory_space<vmem>>, vector<1x128x16xf32>,
    return
  }
  func.func @transform_0(%arg0: i32, %arg1: i32) -> (i32, i32, i32, i32, i32) {
    %c0_i32 = arith.constant 0 : i32
    %c0_i32_0 = arith.constant 0 : i32
    %c0_i32_1 = arith.constant 0 : i32
    %c0_i32_2 = arith.constant 0 : i32
    return %arg0, %arg1, %c0_i32, %c0_i32_0, %c0_i32_1 : i32, i32, i32, i32, i32
  }
  func.func @transform_1(%arg0: i32, %arg1: i32) -> (i32, i32) {
    %c0_i32 = arith.constant 0 : i32
    %c0_i32_0 = arith.constant 0 : i32
    %c0_i32_1 = arith.constant 0 : i32
    return %c0_i32, %c0_i32_0 : i32, i32
  }
  func.func @transform_2(%arg0: i32, %arg1: i32) -> (i32, i32) {
    %c0_i32 = arith.constant 0 : i32
    %c0_i32_0 = arith.constant 0 : i32
    %c0_i32_1 = arith.constant 0 : i32
    return %c0_i32, %c0_i32_0 : i32, i32
  }
  func.func @transform_3(%arg0: i32, %arg1: i32) -> (i32, i32, i32) {
    %c0_i32 = arith.constant 0 : i32
    %c0_i32_0 = arith.constant 0 : i32
    return %arg0, %arg1, %c0_i32 : i32, i32, i32
  }
}

</mosaic_0001>

<bundles_post_ra>
// kernel: tpu_custom_call.1
= control target key start
LH: loop header
LB: loop body
LE: loop exit
PB: predicated region body
PF: predicated region fallthrough
CT: control target
= control target key end

     0   :  { %s1292_s12 = smov 0   ;;  %s1294_s13 = smov 0   ;;  %s1736_s0 = inlined_call_operand.vmem [shape: bf16[2,2,10,18,8], index: 0, kind: input, shape index: {}]   ;;  %s1737_s1 = inlined_call_operand.vmem [shape: bf16[72,16], index: 1, kind: input, shape index: {}]   ;;  %s1738_s2 = inlined_call_operand.vmem [shape: f32[1,16], index: 2, kind: input, shape index: {}]   ;;  %s1739_s3 = inlined_call_operand.vmem [shape: f32[2,256,16], index: 3, kind: output, shape index: {}]  }
   0x1   :  { %s1296_s14 = smov 0   ;;  %s1298_s15 = smov 0  }
   0x2   :  { %s1300_s16 = smov 0  }
   0x3 LB: > { %s22_s17 = sadd.s32 1, %s1254_s14  ;;  %s25_s18 = sadd.s32 1, %s1258_s15  ;;  %s1262_s16 = sphi %s1300_s16, %s13_s16   ;;  %s1258_s15 = sphi %s1298_s15, %s1743_s15   ;;  %s1254_s14 = sphi %s1296_s14, %s1742_s14   ;;  %s1250_s13 = sphi %s1294_s13, %s1741_s13   ;;  %s1246_s12 = sphi %s1292_s12, %s1740_s12  }
   0x4   : > { %p23_p0 = scmp.ge.s32.totalorder %s22_s17, 2  ;;  %p1057_p1 = scmp.ge.s32.totalorder %s1262_s16, 1 }
   0x5   : > { %p157_p2 = scmp.lt.s32.totalorder %s1262_s16, 5 }
   0x6   : > { %s1745_s17 = smov (%p23_p0, %s22_s17), 0  ;;  %s1747_s18 = smov (!%p23_p0, %s25_s18), %s1258_s15 }
   0x7   : > { %p158_p3 = pnand %p1057_p1, %p157_p2  ;;  %p27_p4 = scmp.ge.s32.totalorder %s1747_s18, 2 }
   0x8   : > { %p189_p5 = scmp.lt.s32.totalorder (!%p158_p3), %s1250_s13, 1  ;;  %p191_p6 = scmp.lt.s32.totalorder (!%p158_p3), %s1246_s12, 1 }
   0x9   : > { %s1749_s18 = smov (%p27_p4, %s1747_s18), 0  ;;  %161 = sbr.rel (%p158_p3) target bundleno = 469 (0x1d5), region = 32 }
   0xa   : > { %s1264_s27 = smov (!%p158_p3), 24   ;;  %s1265_s28 = smov (!%p158_p3), 16  }
   0xb   : > { %s1266_s29 = smov (!%p158_p3), 8   ;;  %s1267_s30 = smov (!%p158_p3), 32  }
   0xc   : > { %s1268_s4 = smov (!%p158_p3), 40   ;;  %s1269_s9 = smov (!%p158_p3), 48  }
   0xd   : > { %s1271_s24 = smov (!%p158_p3), 64   ;;  %s1059_s25 = sshll.u32 (!%p158_p3), %s1246_s12, 4 }
   0xe   : > { %s1751_s13 = smov (!%p189_p5, %s1250_s13), 1  ;;  %vm416_vm0 = vcmask 1046528   ;;  %vm303_vm1 = vsmask.f32 7424  ;;  %vm795_vm2 = vcmask 1043456   ;;  %vm599_vm3 = vcmask 64512  }
   0xf   : > { %s192_s19 = scalar_select %p191_p6, %s1246_s12, 1  ;;  %vm616_vm4 = vcmask 130048   ;;  %vm650_vm5 = vcmask 261120   ;;  %vm633_vm6 = vcmask 195584   ;;  %vm667_vm7 = vcmask 326656  }
  0x10   : > { %s1150_s20 = smul.u32 60, %s1751_s13  ;;  %vm684_vm8 = vcmask 392192   ;;  %vm701_vm9 = vcmask 457728   ;;  %vm718_vm10 = vcmask 523264   ;;  %vm778_vm11 = vcmask 588800   ;;  %p201_p7 = scmp.lt.s32.totalorder %s1059_s25, 31 }
  0x11   : > { %s1149_s21 = smul.u32 30, %s192_s19 }
  0x12   : > { %s1753_s25 = smov (!%p201_p7, %s1059_s25), 31 }
  0x13   : > { %s195_s22 = sadd.s32 %s1150_s20, %s1149_s21  ;;  %s1270_s21 = smov 56  }
  0x14   : > { %s1058_s23 = sshll.u32 %s195_s22, 2 }
  0x15   : > { %s1332_s26 = scalar_lea.vmem %s1736_s0, %s1058_s23 }
  0x16   : > { %v1335_v0 = vld [vmem:[%s1332_s26 + $0x3c] sm:$0xff]   ;;  %v1338_v1 = vld [vmem:[%s1332_s26 + $0xc] sm:$0xff]   ;;  %v1202_v3 = vld [vmem:[%s1332_s26 + $0x38] ss:$0 sps:$4 sm:$0x11]  }
  0x17   : > { %470 = vrot.lane.b32.xlu1 %v1335_v0, %s1264_s27  ;;  %462 = vrot.lane.b32.xlu0 %v1338_v1, %s1264_s27  ;;  %v1345_v2 = vld [vmem:[%s1332_s26 + $0x30] sm:$0xff]   ;;  %v1349_v4 = vld [vmem:[%s1332_s26] sm:$0xff]   ;;  %v432_v5 = vrot.slane %v1335_v0, 1  ;;  %v430_v7 = vrot.slane %v1202_v3, 1  ;;  %v420_v9 = vrot.slane %v1338_v1, 1  ;;  %v317_v16 = vshrl.u32 %v1338_v1, 16 }
  0x18   : > { %v429_v6 = vrot.slane %v1345_v2, 1  ;;  %v1204_v8 = vld [vmem:[%s1332_s26 + $0x8] ss:$0 sps:$4 sm:$0x11]   ;;  %v417_v10 = vrot.slane %v1349_v4, 1  ;;  %v319_v17 = vshll.u32 %v1338_v1, 16 }
  0x19   : > { %v1205_v11 = vld [vmem:[%s1332_s26 + $0x44] ss:$0 sps:$4 sm:$0x11]   ;;  %v418_v13 = vrot.slane %v1204_v8, 1  ;;  %v305_v18 = vshrl.u32 %v1349_v4, 16  ;;  %v307_v22 = vshll.u32 %v1349_v4, 16 }
  0x1a   : > { %v1358_v12 = vsel %vm416_vm0, %v429_v6, %v430_v7  ;;  %v1206_v14 = vld [vmem:[%s1332_s26 + $0x14] ss:$0 sps:$4 sm:$0x11]   ;;  %v433_v15 = vrot.slane %v1205_v11, 1  ;;  %v321_v24 = vrot.slane %v319_v17, 1  ;;  %v312_v25 = vshll.u32 %v1204_v8, 16 }
  0x1b   : > { %449 = vrot.lane.b32.xlu1 %v1358_v12, %s1265_s28  ;;  %v419_v19 = vsel %vm416_vm0, %v417_v10, %v418_v13  ;;  %v421_v20 = vrot.slane %v1206_v14, 1  ;;  %v324_v21 = vshll.u32 %v1206_v14, 16  ;;  %v365_v26 = vshrl.u32 %v1335_v0, 16  ;;  %v1382_v39 = vld [vmem:[%s1332_s26 + $0x48] sm:$0xff]   ;;  %v1389_v46 = vld [vmem:[%s1332_s26 + $0x18] sm:$0xff]   ;;  %v1409_v57 = vld [vmem:[%s1332_s26 + $0x60] sm:$0xff]  }
  0x1c   : > { %441 = vrot.lane.b32.xlu0 %v419_v19, %s1265_s28  ;;  %v1370_v23 = vsel %vm416_vm0, %v432_v5, %v433_v15  ;;  %v309_v29 = vrot.slane %v307_v22, 1  ;;  %v367_v30 = vshll.u32 %v1335_v0, 16  ;;  %v322_v31 = vor.u32 %v321_v24, %v317_v16  ;;  %v1209_v47 = vld [vmem:[%s1332_s26 + $0x50] ss:$0 sps:$4 sm:$0x11]  }
  0x1d   : > { %v1374_v27 = vsel %vm416_vm0, %v420_v9, %v421_v20  ;;  %v326_v28 = vrot.slane %v324_v21, 1  ;;  %v314_v32 = vrot.slane %v312_v25, 1  ;;  %v372_v33 = vshll.u32 %v1205_v11, 16  ;;  %v1399_v51 = vld [vmem:[%s1332_s26 + $0x20] ss:$0 sps:$4 sm:$0x11]  }
  0x1e   : > { %v353_v34 = vshrl.u32 %v1345_v2, 16  ;;  %v310_v35 = vor.u32 %v309_v29, %v305_v18  ;;  %v369_v36 = vrot.slane %v367_v30, 1  ;;  %v355_v37 = vshll.u32 %v1345_v2, 16  ;;  %v1418_v61 = vld [vmem:[%s1332_s26 + $0x6c] sm:$0xff]  }
  0x1f   : > { %451 = vrot.lane.b32.xlu1 %v1370_v23, %s1265_s28  ;;  %v360_v38 = vshll.u32 %v1202_v3, 16  ;;  %v327_v40 = vsel %vm303_vm1, %v322_v31, %v326_v28  ;;  %v374_v41 = vrot.slane %v372_v33, 1  ;;  %v379_v50 = vshll.u32 %v1382_v39, 16  ;;  %v1216_v3 = vld [vmem:[%s1332_s26 + $0x68] ss:$0 sps:$4 sm:$0x11]  }
  0x20   : > { %443 = vrot.lane.b32.xlu0 %v1374_v27, %s1265_s28  ;;  %v315_v42 = vsel %vm303_vm1, %v310_v35, %v314_v32  ;;  %v370_v43 = vor.u32 %v369_v36, %v365_v26  ;;  %v357_v44 = vrot.slane %v355_v37, 1  ;;  %v331_v53 = vshll.u32 %v1389_v46, 16  ;;  %v1218_v15 = vld [vmem:[%s1332_s26 + $0x74] ss:$0 sps:$4 sm:$0x11]  }
  0x21   : > { %v362_v45 = vrot.slane %v360_v38, 1  ;;  %v377_v54 = vshrl.u32 %v1382_v39, 16  ;;  %v381_v55 = vrot.slane %v379_v50, 1  ;;  %v384_v56 = vshll.u32 %v1209_v47, 16  ;;  %v1219_v37 = vld [vmem:[%s1737_s1 + $0x20] ss:$0 sps:$4 sm:$0xff]  }
  0x22   : > { %v1394_v48 = vsel %vm303_vm1, %v370_v43, %v374_v41  ;;  %v358_v49 = vor.u32 %v357_v44, %v353_v34  ;;  %v336_v58 = vshll.u32 %v1399_v51, 16  ;;  %v329_v59 = vshrl.u32 %v1389_v46, 16  ;;  %1147 = vmatprep.subr.msk.bf16.mxu0 %vm795_vm2, %v1219_v37  ;;  %v1475_v43 = vld [vmem:[%s1332_s26 + $0x24] sm:$0xff]   ;;  %1148 = vmatprep.subr.msk.bf16.mxu1 %vm795_vm2, %v1219_v37  ;;  %v1220_v44 = vld [vmem:[%s1737_s1 + $0x18] sm:$0xff]   ;;  %v1221_v50 = vld [vmem:[%s1737_s1 + $0x10] sm:$0xff]  }
  0x23   : > { %402 = vrot.lane.b32.xlu1 %v327_v40, %s1266_s29  ;;  %v333_v60 = vrot.slane %v331_v53, 1  ;;  %v382_v62 = vor.u32 %v381_v55, %v377_v54  ;;  %v386_v63 = vrot.slane %v384_v56, 1  ;;  %v482_v5 = vshrl.u32 %v1409_v57, 16 }
  0x24   : > { %400 = vrot.lane.b32.xlu0 %v315_v42, %s1266_s29  ;;  %v1402_v52 = vsel %vm303_vm1, %v358_v49, %v362_v45  ;;  %v484_v6 = vshll.u32 %v1409_v57, 16  ;;  %v338_v7 = vrot.slane %v336_v58, 1  ;;  %v509_v8 = vrot.slane %v1409_v57, 1  ;;  %v1213_v45 = vld [vmem:[%s1332_s26 + $0x5c] ss:$0 sps:$4 sm:$0x11]  }
  0x25   : > { %v334_v9 = vor.u32 %v333_v60, %v329_v59  ;;  %v489_v11 = vshll.u32 %v1216_v3, 16  ;;  %v553_v13 = vshrl.u32 %v1418_v61, 16  ;;  %v510_v14 = vrot.slane %v1216_v3, 1  ;;  %v1222_v59 = vld [vmem:[%s1737_s1 + $0x8] sm:$0xff]  }
  0x26   : > { %v486_v10 = vrot.slane %v484_v6, 1  ;;  %v555_v16 = vshll.u32 %v1418_v61, 16  ;;  %v580_v17 = vrot.slane %v1418_v61, 1  ;;  %v1433_v18 = vsel %vm303_vm1, %v382_v62, %v386_v63 }
  0x27   : > { %410 = vrot.lane.b32.xlu1 %v1394_v48, %s1266_s29  ;;  %v491_v20 = vrot.slane %v489_v11, 1  ;;  %v1437_v21 = vsel %vm416_vm0, %v509_v8, %v510_v14  ;;  %v560_v24 = vshll.u32 %v1218_v15, 16  ;;  %v581_v25 = vrot.slane %v1218_v15, 1 }
  0x28   : > { %408 = vrot.lane.b32.xlu0 %v1402_v52, %s1266_s29  ;;  %v487_v19 = vor.u32 %v486_v10, %v482_v5  ;;  %v557_v22 = vrot.slane %v555_v16, 1  ;;  %v1440_v26 = vsel %vm303_vm1, %v334_v9, %v338_v7  ;;  %v435_v32 = vrot.slane %v1382_v39, 1  ;;  %v1223_v5 = vld [vmem:[%s1737_s1] sm:$0xff]  }
  0x29   : > { %v562_v30 = vrot.slane %v560_v24, 1  ;;  %v1448_v31 = vsel %vm416_vm0, %v580_v17, %v581_v25  ;;  %v436_v33 = vrot.slane %v1209_v47, 1  ;;  %v423_v35 = vrot.slane %v1389_v46, 1  ;;  %v1214_v47 = vld [vmem:[%s1332_s26 + $0x2c] ss:$0 sps:$4 sm:$0x11]  }
  0x2a   : > { %v1443_v28 = vsel %vm303_vm1, %v487_v19, %v491_v20  ;;  %v558_v29 = vor.u32 %v557_v22, %v553_v13  ;;  %v424_v36 = vrot.slane %v1399_v51, 1  ;;  %v797_v41 = vsel %vm795_vm2, %v1219_v37, 0 }
  0x2b   : > { %472 = vrot.lane.b32.xlu1 %v1382_v39, %s1264_s27  ;;  %v1464_v38 = vsel %vm416_vm0, %v435_v32, %v436_v33  ;;  %1112 = vmatpush3.bf16.msra.mxu0 %v797_v41  ;;  %v343_v49 = vshll.u32 %v1475_v43, 16  ;;  %v396_v54 = vshll.u32 %v1213_v45, 16  ;;  %v341_v55 = vshrl.u32 %v1475_v43, 16 }
  0x2c   : > { %464 = vrot.lane.b32.xlu0 %v1389_v46, %s1264_s27  ;;  %v1454_v34 = vsel %vm303_vm1, %v558_v29, %v562_v30  ;;  %v1472_v42 = vsel %vm416_vm0, %v423_v35, %v424_v36  ;;  %1142 = vmatpush3.bf16.msra.mxu1 %v797_v41  ;;  %v348_v58 = vshll.u32 %v1214_v47, 16  ;;  %v439_v9 = vrot.slane %v1213_v45, 1 }
  0x2d   : > { %1113 = vmatprep.subr.bf16.mxu0 %v1220_v44  ;;  %1138 = vmatprep.subr.bf16.mxu1 %v1220_v44  ;;  %v345_v56 = vrot.slane %v343_v49, 1  ;;  %v398_v62 = vrot.slane %v396_v54, 1  ;;  %v426_v10 = vrot.slane %v1475_v43, 1  ;;  %v427_v11 = vrot.slane %v1214_v47, 1 }
  0x2e   : > { %v350_v3 = vrot.slane %v348_v58, 1 }
  0x2f   : > { %501 = vrot.lane.b32.xlu1 %v1394_v48, %s1267_s30  ;;  %1114 = vmatpush3.bf16.msra.mxu0 %v1220_v44  ;;  %v346_v63 = vor.u32 %v345_v56, %v341_v55  ;;  %v428_v14 = vsel %vm416_vm0, %v426_v10, %v427_v11 }
  0x30   : > { %493 = vrot.lane.b32.xlu0 %v327_v40, %s1267_s30  ;;  %v1467_v40 = vld [vmem:[%s1332_s26 + $0x54] sm:$0xff]   ;;  %1143 = vmatpush3.bf16.msra.mxu1 %v1220_v44  ;;  %s1060_s26 = sshll.u32 %s1751_s13, 5 }
  0x31   : > { %v389_v51 = vshrl.u32 %v1467_v40, 16  ;;  %1115 = vmatprep.subr.bf16.mxu0 %v1221_v50  ;;  %1139 = vmatprep.subr.bf16.mxu1 %v1221_v50  ;;  %v351_v7 = vsel %vm303_vm1, %v346_v63, %v350_v3  ;;  %v438_v8 = vrot.slane %v1467_v40, 1 }
  0x33   : > { %503 = vrot.lane.b32.xlu1 %v1433_v18, %s1267_s30  ;;  %1116 = vmatpush3.bf16.msra.mxu0 %v1221_v50  ;;  %v440_v13 = vsel %vm416_vm0, %v438_v8, %v439_v9 }
  0x34   : > { %495 = vrot.lane.b32.xlu0 %v1440_v26, %s1267_s30  ;;  %1144 = vmatpush3.bf16.msra.mxu1 %v1221_v50 }
  0x35   : > { %1117 = vmatprep.subr.bf16.mxu0 %v1222_v59  ;;  %1140 = vmatprep.subr.bf16.mxu1 %v1222_v59 }
  0x37   : > { %520 = vrot.lane.b32.xlu1 %v1370_v23, %s1268_s4  ;;  %1118 = vmatpush3.bf16.msra.mxu0 %v1222_v59 }
  0x38   : > { %512 = vrot.lane.b32.xlu0 %v1374_v27, %s1268_s4  ;;  %v391_v27 = vshll.u32 %v1467_v40, 16  ;;  %1145 = vmatpush3.bf16.msra.mxu1 %v1222_v59 }
  0x39   : > { %1119 = vmatprep.subr.bf16.mxu0 %v1223_v5  ;;  %1141 = vmatprep.subr.bf16.mxu1 %v1223_v5 }
  0x3a   : > { %v393_v53 = vrot.slane %v391_v27, 1 }
  0x3b   : > { %522 = vrot.lane.b32.xlu1 %v1464_v38, %s1268_s4  ;;  %1120 = vmatpush3.bf16.msra.mxu0 %v1223_v5 }
  0x3c   : > { %514 = vrot.lane.b32.xlu0 %v1472_v42, %s1268_s4  ;;  %v394_v60 = vor.u32 %v393_v53, %v389_v51  ;;  %1146 = vmatpush3.bf16.msra.mxu1 %v1223_v5 }
  0x3e   : > { %v399_v6 = vsel %vm303_vm1, %v394_v60, %v398_v62 }
  0x3f   : > { %541 = vrot.lane.b32.xlu1 %v1382_v39, %s1269_s9 }
  0x40   : > { %533 = vrot.lane.b32.xlu0 %v1389_v46, %s1269_s9 }
  0x43   : > { %543 = vrot.lane.b32.xlu1 %v1467_v40, %s1269_s9 }
  0x44   : > { %535 = vrot.lane.b32.xlu0 %v1475_v43, %s1269_s9 }
  0x47   : > { %572 = vrot.lane.b32.xlu1 %v1433_v18, %s1270_s21 }
  0x48   : > { %564 = vrot.lane.b32.xlu0 %v1440_v26, %s1270_s21 }
  0x4b   : > { %574 = vrot.lane.b32.xlu1 %v399_v6, %s1270_s21 }
  0x4c   : > { %566 = vrot.lane.b32.xlu0 %v351_v7, %s1270_s21 }
  0x4f   : > { %591 = vrot.lane.b32.xlu1 %v1464_v38, %s1271_s24 }
  0x50   : > { %583 = vrot.lane.b32.xlu0 %v1472_v42, %s1271_s24 }
  0x53   : > { %412 = vrot.lane.b32.xlu1 %v1433_v18, %s1266_s29 }
  0x54   : > { %404 = vrot.lane.b32.xlu0 %v1440_v26, %s1266_s29 }
  0x57   : > { %593 = vrot.lane.b32.xlu1 %v440_v13, %s1271_s24 }
  0x58   : > { %585 = vrot.lane.b32.xlu0 %v428_v14, %s1271_s24 }
  0x5b   : > { %414 = vrot.lane.b32.xlu1 %v399_v6, %s1266_s29 }
  0x5c   : > { %406 = vrot.lane.b32.xlu0 %v351_v7, %s1266_s29 }
  0x5f   : > { %453 = vrot.lane.b32.xlu1 %v1464_v38, %s1265_s28 }
  0x60   : > { %445 = vrot.lane.b32.xlu0 %v1472_v42, %s1265_s28 }
  0x63   : > { %455 = vrot.lane.b32.xlu1 %v440_v13, %s1265_s28 }
  0x64   : > { %447 = vrot.lane.b32.xlu0 %v428_v14, %s1265_s28 }
  0x67   : > { %474 = vrot.lane.b32.xlu1 %v1467_v40, %s1264_s27 }
  0x68   : > { %466 = vrot.lane.b32.xlu0 %v1475_v43, %s1264_s27 }
  0x6b   : > { %476 = vrot.lane.b32.xlu1 %v1409_v57, %s1264_s27 }
  0x6c   : > { %468 = vrot.lane.b32.xlu0 %v1345_v2, %s1264_s27  ;;  %s204_s27 = sadd.s32 %s1060_s26, %s1753_s25 }
  0x6f   : > { %505 = vrot.lane.b32.xlu1 %v399_v6, %s1267_s30 }
  0x70   : > { %497 = vrot.lane.b32.xlu0 %v351_v7, %s1267_s30 }
  0x73   : > { %507 = vrot.lane.b32.xlu1 %v1443_v28, %s1267_s30 }
  0x74   : > { %499 = vrot.lane.b32.xlu0 %v1402_v52, %s1267_s30  ;;  %s1061_s30 = sshll.u32 %s204_s27, 3 }
  0x75   : > { %s1672_s6 = scalar_lea.vmem %s1739_s3, %s1061_s30 }
  0x77   : > { %524 = vrot.lane.b32.xlu1 %v440_v13, %s1268_s4 }
  0x78   : > { %516 = vrot.lane.b32.xlu0 %v428_v14, %s1268_s4 }
  0x7b   : > { %526 = vrot.lane.b32.xlu1 %v1437_v21, %s1268_s4 }
  0x7c   : > { %518 = vrot.lane.b32.xlu0 %v1358_v12, %s1268_s4 }
  0x7f   : > { %545 = vrot.lane.b32.xlu1 %v1409_v57, %s1269_s9 }
  0x80   : > { %537 = vrot.lane.b32.xlu0 %v1345_v2, %s1269_s9 }
  0x83   : > { %547 = vrot.lane.b32.xlu1 %v1418_v61, %s1269_s9 }
  0x84   : > { %539 = vrot.lane.b32.xlu0 %v1335_v0, %s1269_s9 }
  0x87   : > { %576 = vrot.lane.b32.xlu1 %v1443_v28, %s1270_s21 }
  0x88   : > { %568 = vrot.lane.b32.xlu0 %v1402_v52, %s1270_s21 }
  0x89   : > { %v471_v15 = vpop.permute.xlu1 %470  ;;  %v463_v16 = vpop.permute.xlu0 %462 }
  0x8b   : > { %578 = vrot.lane.b32.xlu1 %v1454_v34, %s1270_s21 }
  0x8c   : > { %570 = vrot.lane.b32.xlu0 %v1394_v48, %s1270_s21 }
  0x8d   : > { %v450_v57 = vpop.permute.xlu1 %449 }
  0x8e   : > { %v442_v17 = vpop.permute.xlu0 %441 }
  0x8f   : > { %595 = vrot.lane.b32.xlu1 %v1437_v21, %s1271_s24 }
  0x90   : > { %587 = vrot.lane.b32.xlu0 %v1358_v12, %s1271_s24 }
  0x91   : > { %v452_v61 = vpop.permute.xlu1 %451 }
  0x92   : > { %v444_v18 = vpop.permute.xlu0 %443 }
  0x93   : > { %597 = vrot.lane.b32.xlu1 %v1448_v31, %s1271_s24 }
  0x94   : > { %589 = vrot.lane.b32.xlu0 %v1370_v23, %s1271_s24 }
  0x95   : > { %v403_v52 = vpop.permute.xlu1 %402 }
  0x96   : > { %v401_v19 = vpop.permute.xlu0 %400  ;;  %v603_v59 = vsel %vm599_vm3, %v1338_v1, %v403_v52 }
  0x97   : > { %v601_v36 = vsel %vm599_vm3, %v1349_v4, %v401_v19  ;;  %v620_v6 = vsel %vm616_vm4, %v603_v59, %v444_v18 }
  0x98   : > { %v618_v42 = vsel %vm616_vm4, %v601_v36, %v442_v17 }
  0x99   : > { %v411_v20 = vpop.permute.xlu1 %410  ;;  %v635_v27 = vsel %vm633_vm6, %v618_v42, %v463_v16 }
  0x9a   : > { %v409_v48 = vpop.permute.xlu0 %408  ;;  %v611_v51 = vsel %vm599_vm3, %v1335_v0, %v411_v20 }
  0x9b   : > { %v609_v23 = vsel %vm599_vm3, %v1345_v2, %v409_v48  ;;  %v628_v63 = vsel %vm616_vm4, %v611_v51, %v452_v61 }
  0x9c   : > { %v626_v38 = vsel %vm616_vm4, %v609_v23, %v450_v57 }
  0x9d   : > { %v473_v22 = vpop.permute.xlu1 %472  ;;  %v643_v44 = vsel %vm633_vm6, %v626_v38, %v471_v15 }
  0x9e   : > { %v465_v24 = vpop.permute.xlu0 %464  ;;  %v645_v3 = vsel %vm633_vm6, %v628_v63, %v473_v22 }
  0x9f   : > { %v637_v1 = vsel %vm633_vm6, %v620_v6, %v465_v24 }
  0xa1   : > { %v502_v25 = vpop.permute.xlu1 %501 }
  0xa2   : > { %v494_v26 = vpop.permute.xlu0 %493  ;;  %v660_v2 = vsel %vm650_vm5, %v643_v44, %v502_v25 }
  0xa3   : > { %v652_v49 = vsel %vm650_vm5, %v635_v27, %v494_v26 }
  0xa5   : > { %v504_v21 = vpop.permute.xlu1 %503 }
  0xa6   : > { %v496_v28 = vpop.permute.xlu0 %495  ;;  %v662_v7 = vsel %vm650_vm5, %v645_v3, %v504_v21 }
  0xa7   : > { %v654_v10 = vsel %vm650_vm5, %v637_v1, %v496_v28 }
  0xa9   : > { %v521_v29 = vpop.permute.xlu1 %520 }
  0xaa   : > { %v513_v12 = vpop.permute.xlu0 %512  ;;  %v677_v4 = vsel %vm667_vm7, %v660_v2, %v521_v29 }
  0xab   : > { %v669_v53 = vsel %vm667_vm7, %v652_v49, %v513_v12 }
  0xad   : > { %v523_v30 = vpop.permute.xlu1 %522 }
  0xae   : > { %v515_v32 = vpop.permute.xlu0 %514  ;;  %v679_v8 = vsel %vm667_vm7, %v662_v7, %v523_v30 }
  0xaf   : > { %v671_v13 = vsel %vm667_vm7, %v654_v10, %v515_v32 }
  0xb1   : > { %v542_v33 = vpop.permute.xlu1 %541 }
  0xb2   : > { %v534_v34 = vpop.permute.xlu0 %533  ;;  %v694_v50 = vsel %vm684_vm8, %v677_v4, %v542_v33 }
  0xb3   : > { %v686_v56 = vsel %vm684_vm8, %v669_v53, %v534_v34 }
  0xb5   : > { %v544_v31 = vpop.permute.xlu1 %543 }
  0xb6   : > { %v536_v35 = vpop.permute.xlu0 %535  ;;  %v696_v11 = vsel %vm684_vm8, %v679_v8, %v544_v31 }
  0xb7   : > { %v688_v16 = vsel %vm684_vm8, %v671_v13, %v536_v35 }
  0xb9   : > { %v573_v37 = vpop.permute.xlu1 %572 }
  0xba   : > { %v565_v41 = vpop.permute.xlu0 %564  ;;  %v711_v54 = vsel %vm701_vm9, %v694_v50, %v573_v37 }
  0xbb   : > { %v703_v60 = vsel %vm701_vm9, %v686_v56, %v565_v41 }
  0xbd   : > { %v575_v45 = vpop.permute.xlu1 %574 }
  0xbe   : > { %v567_v47 = vpop.permute.xlu0 %566  ;;  %v713_v14 = vsel %vm701_vm9, %v696_v11, %v575_v45 }
  0xbf   : > { %v705_v17 = vsel %vm701_vm9, %v688_v16, %v567_v47 }
  0xc1   : > { %v592_v55 = vpop.permute.xlu1 %591 }
  0xc2   : > { %v728_v58 = vsel %vm718_vm10, %v711_v54, %v592_v55  ;;  %v584_v62 = vpop.permute.xlu0 %583 }
  0xc3   : > { %1129 = vmatprep.mubr.msk.bf16.mxu1 %vm778_vm11, %v728_v58  ;;  %v720_v0 = vsel %vm718_vm10, %v703_v60, %v584_v62 }
  0xc4   : > { %1121 = vmatprep.mubr.msk.bf16.mxu0 %vm778_vm11, %v720_v0 }
  0xc5   : > { %v413_v5 = vpop.permute.xlu1 %412 }
  0xc6   : > { %v405_v9 = vpop.permute.xlu0 %404  ;;  %v613_v42 = vsel %vm599_vm3, %v1382_v39, %v413_v5 }
  0xc7   : > { %v605_v2 = vsel %vm599_vm3, %v1389_v46, %v405_v9 }
  0xc9   : > { %v594_v15 = vpop.permute.xlu1 %593 }
  0xca   : > { %v730_v57 = vsel %vm718_vm10, %v713_v14, %v594_v15  ;;  %v586_v61 = vpop.permute.xlu0 %585 }
  0xcb   : > { %1130 = vmatmul.mubr.msk.bf16.vlgmr.msra.gmra.mxu1 %vm778_vm11, %v730_v57  ;;  %v722_v18 = vsel %vm718_vm10, %v705_v17, %v586_v61  ;;  %v1666_v61 = vld [vmem:[%s1738_s2] ss:$0 sm:$0xff] }
  0xcc   : > { %1122 = vmatmul.mubr.msk.bf16.vlgmr.msra.gmra.mxu0 %vm778_vm11, %v722_v18 }
  0xcd   : > { %v415_v52 = vpop.permute.xlu1 %414 }
  0xce   : > { %v407_v19 = vpop.permute.xlu0 %406  ;;  %v615_v50 = vsel %vm599_vm3, %v1467_v40, %v415_v52 }
  0xcf   : > { %v607_v56 = vsel %vm599_vm3, %v1475_v43, %v407_v19 }
  0xd1   : > { %v454_v20 = vpop.permute.xlu1 %453 }
  0xd2   : > { %v446_v48 = vpop.permute.xlu0 %445  ;;  %v630_v45 = vsel %vm616_vm4, %v613_v42, %v454_v20 }
  0xd3   : > { %v622_v47 = vsel %vm616_vm4, %v605_v2, %v446_v48 }
  0xd5   : > { %v456_v22 = vpop.permute.xlu1 %455 }
  0xd6   : > { %v448_v24 = vpop.permute.xlu0 %447  ;;  %v632_v54 = vsel %vm616_vm4, %v615_v50, %v456_v22 }
  0xd7   : > { %v624_v62 = vsel %vm616_vm4, %v607_v56, %v448_v24 }
  0xd9   : > { %v475_v25 = vpop.permute.xlu1 %474 }
  0xda   : > { %v467_v26 = vpop.permute.xlu0 %466  ;;  %v647_v27 = vsel %vm633_vm6, %v630_v45, %v475_v25 }
  0xdb   : > { %v639_v51 = vsel %vm633_vm6, %v622_v47, %v467_v26 }
  0xdd   : > { %v477_v21 = vpop.permute.xlu1 %476 }
  0xde   : > { %v469_v28 = vpop.permute.xlu0 %468  ;;  %v649_v58 = vsel %vm633_vm6, %v632_v54, %v477_v21 }
  0xdf   : > { %v641_v5 = vsel %vm633_vm6, %v624_v62, %v469_v28 }
  0xe1   : > { %v506_v29 = vpop.permute.xlu1 %505 }
  0xe2   : > { %v498_v12 = vpop.permute.xlu0 %497  ;;  %v664_v49 = vsel %vm650_vm5, %v647_v27, %v506_v29 }
  0xe3   : > { %v656_v55 = vsel %vm650_vm5, %v639_v51, %v498_v12 }
  0xe5   : > { %v508_v30 = vpop.permute.xlu1 %507 }
  0xe6   : > { %v500_v32 = vpop.permute.xlu0 %499  ;;  %v666_v63 = vsel %vm650_vm5, %v649_v58, %v508_v30 }
  0xe7   : > { %v658_v1 = vsel %vm650_vm5, %v641_v5, %v500_v32 }
  0xe9   : > { %v525_v33 = vpop.permute.xlu1 %524 }
  0xea   : > { %v517_v34 = vpop.permute.xlu0 %516  ;;  %v681_v39 = vsel %vm667_vm7, %v664_v49, %v525_v33 }
  0xeb   : > { %v673_v59 = vsel %vm667_vm7, %v656_v55, %v517_v34 }
  0xed   : > { %v527_v31 = vpop.permute.xlu1 %526 }
  0xee   : > { %v519_v23 = vpop.permute.xlu0 %518  ;;  %v683_v6 = vsel %vm667_vm7, %v666_v63, %v527_v31 }
  0xef   : > { %v675_v10 = vsel %vm667_vm7, %v658_v1, %v519_v23 }
  0xf1   : > { %v546_v35 = vpop.permute.xlu1 %545 }
  0xf2   : > { %v538_v36 = vpop.permute.xlu0 %537  ;;  %v698_v46 = vsel %vm684_vm8, %v681_v39, %v546_v35 }
  0xf3   : > { %v690_v0 = vsel %vm684_vm8, %v673_v59, %v538_v36 }
  0xf5   : > { %v548_v37 = vpop.permute.xlu1 %547 }
  0xf6   : > { %v540_v38 = vpop.permute.xlu0 %539  ;;  %v700_v8 = vsel %vm684_vm8, %v683_v6, %v548_v37 }
  0xf7   : > { %v692_v14 = vsel %vm684_vm8, %v675_v10, %v540_v38 }
  0xf9   : > { %v577_v41 = vpop.permute.xlu1 %576 }
  0xfa   : > { %v569_v44 = vpop.permute.xlu0 %568  ;;  %v715_v40 = vsel %vm701_vm9, %v698_v46, %v577_v41 }
  0xfb   : > { %v707_v43 = vsel %vm701_vm9, %v690_v0, %v569_v44 }
  0xfd   : > { %v579_v4 = vpop.permute.xlu1 %578 }
  0xfe   : > { %v571_v53 = vpop.permute.xlu0 %570  ;;  %v717_v11 = vsel %vm701_vm9, %v700_v8, %v579_v4 }
  0xff   : > { %v709_v16 = vsel %vm701_vm9, %v692_v14, %v571_v53 }
 0x101   : > { %v596_v60 = vpop.permute.xlu1 %595 }
 0x102   : > { %v732_v3 = vsel %vm718_vm10, %v715_v40, %v596_v60  ;;  %v588_v7 = vpop.permute.xlu0 %587 }
 0x103   : > { %1133 = vmatprep.mubr.msk.bf16.mxu1 %vm778_vm11, %v732_v3  ;;  %v724_v9 = vsel %vm718_vm10, %v707_v43, %v588_v7 }
 0x104   : > { %1125 = vmatprep.mubr.msk.bf16.mxu0 %vm778_vm11, %v724_v9 }
 0x105   : > { %v598_v13 = vpop.permute.xlu1 %597 }
 0x106   : > { %v734_v15 = vsel %vm718_vm10, %v717_v11, %v598_v13  ;;  %v590_v57 = vpop.permute.xlu0 %589 }
 0x107   : > { %1134 = vmatmul.mubr.msk.bf16.gmra.mxu1 %vm778_vm11, %v734_v15  ;;  %v726_v17 = vsel %vm718_vm10, %v709_v16, %v590_v57 }
 0x108   : > { %1126 = vmatmul.mubr.msk.bf16.gmra.mxu0 %vm778_vm11, %v726_v17 }
 0x18b   : > { %v1131_v18 = vpop.f32.mrf.mxu1 }
 0x18c   : > { %v874_v52 = vadd.f32 %v1131_v18, %v1666_v61  ;;  %v1123_v19 = vpop.f32.mrf.mxu0 }
 0x18d   : > { %v865_v20 = vpop.f32.mrf.mxu1  ;;  %v842_v48 = vadd.f32 %v1123_v19, %v1666_v61 }
 0x18e   : > { %vm906_vm12 = vcmp.gt.f32.partialorder %v874_v52, 0.0  ;;  %v922_v22 = vmul.f32 0.2, %v874_v52  ;;  %v866_v24 = vadd.f32 %v1666_v61, %v865_v20  ;;  %v833_v25 = vpop.f32.mrf.mxu0 }
 0x18f   : > { %v1132_v26 = vpop.f32.mrf.mxu1  ;;  %vm898_vm13 = vcmp.gt.f32.partialorder %v842_v48, 0.0  ;;  %v914_v21 = vmul.f32 0.2, %v842_v48  ;;  %v834_v29 = vadd.f32 %v1666_v61, %v833_v25 }
 0x190   : > { %v938_v28 = vsel %vm906_vm12, %v874_v52, %v922_v22  ;;  %vm904_vm14 = vcmp.gt.f32.partialorder %v866_v24, 0.0  ;;  %v920_v12 = vmul.f32 0.2, %v866_v24  ;;  %v1124_v30 = vpop.f32.mrf.mxu0  ;;  %v877_v32 = vadd.f32 %v1132_v26, %v1666_v61 }
 0x191   : > { %954 = vst.msk [vmem:[%s1672_s6 + $0x50] sm:$0xff] %vm616_vm4, %v938_v28  ;;  %v868_v33 = vpop.f32.mrf.mxu1  ;;  %v930_v34 = vsel %vm898_vm13, %v842_v48, %v914_v21  ;;  %vm896_vm15 = vcmp.gt.f32.partialorder %v834_v29, 0.0  ;;  %v912_v31 = vmul.f32 0.2, %v834_v29  ;;  %v845_v23 = vadd.f32 %v1124_v30, %v1666_v61 }
 0x192   : > { %946 = vst.msk [vmem:[%s1672_s6 + $0x10] sm:$0xff] %vm616_vm4, %v930_v34  ;;  %v936_v35 = vsel %vm904_vm14, %v866_v24, %v920_v12  ;;  %vm907_vm0 = vcmp.gt.f32.partialorder %v877_v32, 0.0  ;;  %v923_v36 = vmul.f32 0.2, %v877_v32  ;;  %v836_v37 = vpop.f32.mrf.mxu0  ;;  %v869_v38 = vadd.f32 %v1666_v61, %v868_v33 }
 0x193   : > { %v928_v41 = vsel %vm896_vm15, %v834_v29, %v912_v31  ;;  %952 = vst.msk [vmem:[%s1672_s6 + $0x40] sm:$0xff] %vm616_vm4, %v936_v35  ;;  %vm899_vm1 = vcmp.gt.f32.partialorder %v845_v23, 0.0  ;;  %v915_v42 = vmul.f32 0.2, %v845_v23  ;;  %v837_v44 = vadd.f32 %v1666_v61, %v836_v37 }
 0x194   : > { %944 = vst.msk [vmem:[%s1672_s6] sm:$0xff] %vm616_vm4, %v928_v41  ;;  %v939_v45 = vsel %vm907_vm0, %v877_v32, %v923_v36  ;;  %vm905_vm2 = vcmp.gt.f32.partialorder %v869_v38, 0.0  ;;  %v921_v2 = vmul.f32 0.2, %v869_v38 }
 0x195   : > { %v931_v27 = vsel %vm899_vm1, %v845_v23, %v915_v42  ;;  %955 = vst.msk [vmem:[%s1672_s6 + $0x58] sm:$0xff] %vm616_vm4, %v939_v45  ;;  %vm897_vm3 = vcmp.gt.f32.partialorder %v837_v44, 0.0  ;;  %v913_v4 = vmul.f32 0.2, %v837_v44 }
 0x196   : > { %947 = vst.msk [vmem:[%s1672_s6 + $0x18] sm:$0xff] %vm616_vm4, %v931_v27  ;;  %v937_v47 = vsel %vm905_vm2, %v869_v38, %v921_v2 }
 0x197   : > { %v929_v49 = vsel %vm897_vm3, %v837_v44, %v913_v4  ;;  %953 = vst.msk [vmem:[%s1672_s6 + $0x48] sm:$0xff] %vm616_vm4, %v937_v47 }
 0x198   : > { %945 = vst.msk [vmem:[%s1672_s6 + $0x8] sm:$0xff] %vm616_vm4, %v929_v49 }
 0x1c7   : > { %v1135_v50 = vpop.f32.mrf.mxu1 }
 0x1c8   : > { %v890_v51 = vadd.f32 %v1135_v50, %v1666_v61  ;;  %v1127_v39 = vpop.f32.mrf.mxu0 }
 0x1c9   : > { %v881_v53 = vpop.f32.mrf.mxu1  ;;  %v858_v54 = vadd.f32 %v1127_v39, %v1666_v61 }
 0x1ca   : > { %vm910_vm5 = vcmp.gt.f32.partialorder %v890_v51, 0.0  ;;  %v926_v55 = vmul.f32 0.2, %v890_v51  ;;  %v882_v46 = vadd.f32 %v1666_v61, %v881_v53  ;;  %v849_v56 = vpop.f32.mrf.mxu0 }
 0x1cb   : > { %v1136_v58 = vpop.f32.mrf.mxu1  ;;  %vm902_vm6 = vcmp.gt.f32.partialorder %v858_v54, 0.0  ;;  %v918_v59 = vmul.f32 0.2, %v858_v54  ;;  %v850_v60 = vadd.f32 %v1666_v61, %v849_v56 }
 0x1cc   : > { %v942_v40 = vsel %vm910_vm5, %v890_v51, %v926_v55  ;;  %vm908_vm7 = vcmp.gt.f32.partialorder %v882_v46, 0.0  ;;  %v924_v62 = vmul.f32 0.2, %v882_v46  ;;  %v1128_v63 = vpop.f32.mrf.mxu0  ;;  %v893_v0 = vadd.f32 %v1136_v58, %v1666_v61 }
 0x1cd   : > { %958 = vst.msk [vmem:[%s1672_s6 + $0x70] sm:$0xff] %vm616_vm4, %v942_v40  ;;  %v884_v3 = vpop.f32.mrf.mxu1  ;;  %v934_v5 = vsel %vm902_vm6, %v858_v54, %v918_v59  ;;  %vm900_vm8 = vcmp.gt.f32.partialorder %v850_v60, 0.0  ;;  %v916_v6 = vmul.f32 0.2, %v850_v60  ;;  %v861_v43 = vadd.f32 %v1128_v63, %v1666_v61 }
 0x1ce   : > { %950 = vst.msk [vmem:[%s1672_s6 + $0x30] sm:$0xff] %vm616_vm4, %v934_v5  ;;  %v940_v7 = vsel %vm908_vm7, %v882_v46, %v924_v62  ;;  %vm911_vm9 = vcmp.gt.f32.partialorder %v893_v0, 0.0  ;;  %v927_v1 = vmul.f32 0.2, %v893_v0  ;;  %v852_v8 = vpop.f32.mrf.mxu0  ;;  %v885_v9 = vadd.f32 %v1666_v61, %v884_v3 }
 0x1cf   : > { %v932_v10 = vsel %vm900_vm8, %v850_v60, %v916_v6  ;;  %956 = vst.msk [vmem:[%s1672_s6 + $0x60] sm:$0xff] %vm616_vm4, %v940_v7  ;;  %vm903_vm10 = vcmp.gt.f32.partialorder %v861_v43, 0.0  ;;  %v919_v11 = vmul.f32 0.2, %v861_v43  ;;  %v853_v13 = vadd.f32 %v1666_v61, %v852_v8 }
 0x1d0   : > { %948 = vst.msk [vmem:[%s1672_s6 + $0x20] sm:$0xff] %vm616_vm4, %v932_v10  ;;  %v943_v14 = vsel %vm911_vm9, %v893_v0, %v927_v1  ;;  %vm909_vm11 = vcmp.gt.f32.partialorder %v885_v9, 0.0  ;;  %v925_v15 = vmul.f32 0.2, %v885_v9 }
 0x1d1   : > { %v935_v16 = vsel %vm903_vm10, %v861_v43, %v919_v11  ;;  %959 = vst.msk [vmem:[%s1672_s6 + $0x78] sm:$0xff] %vm616_vm4, %v943_v14  ;;  %vm901_vm12 = vcmp.gt.f32.partialorder %v853_v13, 0.0  ;;  %v917_v57 = vmul.f32 0.2, %v853_v13 }
 0x1d2   : > { %951 = vst.msk [vmem:[%s1672_s6 + $0x38] sm:$0xff] %vm616_vm4, %v935_v16  ;;  %v941_v17 = vsel %vm909_vm11, %v885_v9, %v925_v15 }
 0x1d3   : > { %v933_v18 = vsel %vm901_vm12, %v853_v13, %v917_v57  ;;  %957 = vst.msk [vmem:[%s1672_s6 + $0x68] sm:$0xff] %vm616_vm4, %v941_v17 }
 0x1d4   : > { %949 = vst.msk [vmem:[%s1672_s6 + $0x28] sm:$0xff] %vm616_vm4, %v933_v18 }
 0x1d5 PF: > { %s13_s16 = sadd.s32 1, %s1262_s16   ;;  %s1740_s12 = smov %s1254_s14 }
 0x1d6   : > { %p10_p8 = scmp.ge.s32.totalorder %s13_s16, 6   ;;  %s1741_s13 = smov %s1258_s15 }
 0x1d7   : > { %s1742_s14 = smov %s1745_s17  ;;  %s1743_s15 = smov %s1749_s18 }
 0x1d8   :  { %12 = sbr.rel (!%p10_p8) target bundleno = 3 (0x3), region = 62 }

</bundles_post_ra>
